<compile_context>
chip_gen: v7x
topology: tpu7x:2x2x1
jax: 0.10.0
libtpu: 0.0.40
codegen_flags: <defaults>
</compile_context>

<pallas_src>
import math
from functools import partial

import jax
import jax.numpy as jnp
from jax import lax
from jax.experimental import pallas as pl
from jax.experimental.pallas import tpu as pltpu


def _choose_tq(S: int) -> int:
    """Query-tile size: whole sequence if small, else the largest divisor of S
    that is <= 256 and a multiple of 8 (sublane alignment)."""
    if S <= 256:
        return S
    for tq in (256, 128, 64, 32, 16, 8):
        if S % tq == 0:
            return tq
    return S  # irregular S: fall back to a single whole-sequence block


def _sdpa_kernel(q_ref, k_ref, v_ref, ctx_ref, attn_ref, *, inv_sqrt_dk):
    # Blocks: q (1, TQ, D); k, v (1, S, D); ctx (1, TQ, D); attn (1, TQ, S)
    q = q_ref[0]
    k = k_ref[0]
    v = v_ref[0]

    # Q @ K^T with the transpose folded into the MXU contraction (no k.T).
    scores = lax.dot_general(
        q, k, dimension_numbers=(((1,), (1,)), ((), ())),
        preferred_element_type=jnp.float32) * inv_sqrt_dk
    scores = jnp.exp(scores)                                   # EUP

    denom = jnp.sum(scores, axis=-1, keepdims=True) + 1e-8     # (TQ, 1)
    # Exact reciprocal on the (TQ, 1) vector + broadcast multiply instead of a
    # full (TQ, S) divide on the VPU critical path.
    attn = scores * (1.0 / denom)

    ctx = jnp.dot(attn, v, preferred_element_type=jnp.float32)

    ctx_ref[0] = ctx.astype(ctx_ref.dtype)
    attn_ref[0] = attn.astype(attn_ref.dtype)


def _sdpa_kernel_masked(q_ref, k_ref, v_ref, m_ref, ctx_ref, attn_ref, *,
                        inv_sqrt_dk):
    q = q_ref[0]
    k = k_ref[0]
    v = v_ref[0]
    m = m_ref[0].astype(jnp.float32)   # mask may arrive as bf16 (0/1 exact)

    scores = lax.dot_general(
        q, k, dimension_numbers=(((1,), (1,)), ((), ())),
        preferred_element_type=jnp.float32) * inv_sqrt_dk
    scores = jnp.exp(scores) * m

    denom = jnp.sum(scores, axis=-1, keepdims=True) + 1e-8
    attn = scores * (1.0 / denom)

    ctx = jnp.dot(attn, v, preferred_element_type=jnp.float32)

    ctx_ref[0] = ctx.astype(ctx_ref.dtype)
    attn_ref[0] = attn.astype(attn_ref.dtype)


def scaled_dot_product_attention(Q, K, V, attn_mask=None, *, d_k=None):
    """Pallas TPU scaled-dot-product attention.

    Q, K, V: [B, S, D]. attn_mask: [B, S, S] (multiplicative) or None.
    Returns (context [B, S, D], attn [B, S, S]) in float32.
    """
    B, S, D = Q.shape
    if d_k is None:
        d_k = D
    inv_sqrt_dk = 1.0 / math.sqrt(float(d_k))

    TQ = _choose_tq(S)
    grid = (B, S // TQ)

    Q = Q.astype(jnp.float32)
    K = K.astype(jnp.float32)
    V = V.astype(jnp.float32)

    q_spec = pl.BlockSpec((1, TQ, D), lambda b, q: (b, q, 0))
    kv_spec = pl.BlockSpec((1, S, D), lambda b, q: (b, 0, 0))   # resident over q
    ctx_spec = pl.BlockSpec((1, TQ, D), lambda b, q: (b, q, 0))
    attn_spec = pl.BlockSpec((1, TQ, S), lambda b, q: (b, q, 0))

    out_shape = (
        jax.ShapeDtypeStruct((B, S, D), jnp.float32),
        jax.ShapeDtypeStruct((B, S, S), jnp.float32),
    )

    # Advisory cost hint for XLA scheduling around the custom call.
    mask_bytes = 0
    if attn_mask is not None:
        if attn_mask.dtype == jnp.bool_ or jnp.issubdtype(attn_mask.dtype,
                                                          jnp.integer):
            # 0/1 mask: bf16 is exact and halves the mask HBM read stream.
            mask = attn_mask.astype(jnp.bfloat16)
        else:
            # Arbitrary float mask: keep the caller's dtype to preserve exact
            # semantics.
            mask = attn_mask
        mask_bytes = B * S * S * mask.dtype.itemsize

    cost = pl.CostEstimate(
        flops=4 * B * S * S * D,
        transcendentals=B * S * S,
        bytes_accessed=(3 * B * S * D + B * S * D + B * S * S) * 4 + mask_bytes,
    )
    cparams = pltpu.CompilerParams(
        dimension_semantics=("parallel", "parallel"),
    )

    if attn_mask is None:
        grid_spec = pltpu.PrefetchScalarGridSpec(
            num_scalar_prefetch=0,
            grid=grid,
            in_specs=[q_spec, kv_spec, kv_spec],
            out_specs=[ctx_spec, attn_spec],
        )
        kernel = partial(_sdpa_kernel, inv_sqrt_dk=inv_sqrt_dk)
        context, attn = pl.pallas_call(
            kernel, grid_spec=grid_spec, out_shape=out_shape,
            compiler_params=cparams, cost_estimate=cost,
        )(Q, K, V)
    else:
        mask_spec = pl.BlockSpec((1, TQ, S), lambda b, q: (b, q, 0))
        grid_spec = pltpu.PrefetchScalarGridSpec(
            num_scalar_prefetch=0,
            grid=grid,
            in_specs=[q_spec, kv_spec, kv_spec, mask_spec],
            out_specs=[ctx_spec, attn_spec],
        )
        kernel = partial(_sdpa_kernel_masked, inv_sqrt_dk=inv_sqrt_dk)
        context, attn = pl.pallas_call(
            kernel, grid_spec=grid_spec, out_shape=out_shape,
            compiler_params=cparams, cost_estimate=cost,
        )(Q, K, V, mask)

    return context, attn


def _reference(Q, K, V, attn_mask, d_k):
    scores = jnp.matmul(Q, jnp.swapaxes(K, -1, -2)) / math.sqrt(d_k)
    scores = jnp.exp(scores)
    if attn_mask is not None:
        scores = scores * attn_mask
    attn = scores / (jnp.sum(scores, axis=-1, keepdims=True) + 1e-8)
    context = jnp.matmul(attn, V)
    return context, attn


if __name__ == "__main__":
    B, S, D = 2, 8, 32  # batch, sequence, d_k
    key = jax.random.PRNGKey(0)
    kq, kk, kv, km = jax.random.split(key, 4)

    Q = jax.random.normal(kq, (B, S, D), dtype=jnp.float32)
    K = jax.random.normal(kk, (B, S, D), dtype=jnp.float32)
    V = jax.random.normal(kv, (B, S, D), dtype=jnp.float32)
    # Boolean padding-style mask -> exercises the compact bf16 mask path.
    attn_mask_bool = jax.random.uniform(km, (B, S, S)) > 0.2
    attn_mask_f32 = attn_mask_bool.astype(jnp.float32)

    # Masked path
    ctx, attn = scaled_dot_product_attention(Q, K, V, attn_mask_bool, d_k=D)
    ctx = jax.block_until_ready(ctx)
    attn = jax.block_until_ready(attn)
    ref_ctx, ref_attn = _reference(Q, K, V, attn_mask_f32, D)
    assert jnp.allclose(ctx, ref_ctx, atol=1e-5, rtol=1e-5), "context mismatch (masked)"
    assert jnp.allclose(attn, ref_attn, atol=1e-5, rtol=1e-5), "attn mismatch (masked)"

    # No-mask path (no synthetic mask materialized / read)
    ctx2, attn2 = scaled_dot_product_attention(Q, K, V, None, d_k=D)
    ctx2 = jax.block_until_ready(ctx2)
    attn2 = jax.block_until_ready(attn2)
    ref_ctx2, ref_attn2 = _reference(Q, K, V, None, D)
    assert jnp.allclose(ctx2, ref_ctx2, atol=1e-5, rtol=1e-5), "context mismatch (no mask)"
    assert jnp.allclose(attn2, ref_attn2, atol=1e-5, rtol=1e-5), "attn mismatch (no mask)"

    print("KERNEL_OK")
</pallas_src>

<mosaic_0001>
module attributes {stable_mosaic.version = 11 : i64} {
  func.func @_sdpa_kernel_masked(%arg0: i32, %arg1: i32, %arg2: memref<1x8x32xf32, #tpu.memory_space<vmem>>, %arg3: memref<1x8x32xf32, #tpu.memory_space<vmem>>, %arg4: memref<1x8x32xf32, #tpu.memory_space<vmem>>, %arg5: memref<1x8x8xbf16, #tpu.memory_space<vmem>>, %arg6: memref<1x8x32xf32, #tpu.memory_space<vmem>>, %arg7: memref<1x8x8xf32, #tpu.memory_space<vmem>>) attributes {dimension_semantics = [#tpu.dimension_semantics<parallel>, #tpu.dimension_semantics<parallel>], iteration_bounds = array<i64: 2, 1>, scalar_prefetch = 0 : i64, scratch_operands = 0 : i64, tpu.core_type = #tpu.core_type<tc>, window_params = [{transform_indices = @transform_0, window_bounds = array<i64: 1, 8, 32>}, {transform_indices = @transform_1, window_bounds = array<i64: 1, 8, 32>}, {transform_indices = @transform_2, window_bounds = array<i64: 1, 8, 32>}, {transform_indices = @transform_3, window_bounds = array<i64: 1, 8, 8>}, {transform_indices = @transform_4, window_bounds = array<i64: 1, 8, 32>}, {transform_indices = @transform_5, window_bounds = array<i64: 1, 8, 8>}]} {
    %c0 = arith.constant 0 : index
    %c0_0 = arith.constant 0 : index
    %c0_1 = arith.constant 0 : index
    %0 = vector.load %arg2[%c0, %c0_0, %c0_1] : memref<1x8x32xf32, #tpu.memory_space<vmem>>, vector<1x8x32xf32>
    %1 = vector.shape_cast %0 : vector<1x8x32xf32> to vector<8x32xf32>
    %c0_2 = arith.constant 0 : index
    %c0_3 = arith.constant 0 : index
    %c0_4 = arith.constant 0 : index
    %2 = vector.load %arg3[%c0_2, %c0_3, %c0_4] : memref<1x8x32xf32, #tpu.memory_space<vmem>>, vector<1x8x32xf32>
    %3 = vector.shape_cast %2 : vector<1x8x32xf32> to vector<8x32xf32>
    %c0_5 = arith.constant 0 : index
    %c0_6 = arith.constant 0 : index
    %c0_7 = arith.constant 0 : index
    %4 = vector.load %arg4[%c0_5, %c0_6, %c0_7] : memref<1x8x32xf32, #tpu.memory_space<vmem>>, vector<1x8x32xf32>
    %5 = vector.shape_cast %4 : vector<1x8x32xf32> to vector<8x32xf32>
    %c0_8 = arith.constant 0 : index
    %c0_9 = arith.constant 0 : index
    %c0_10 = arith.constant 0 : index
    %6 = vector.load %arg5[%c0_8, %c0_9, %c0_10] : memref<1x8x8xbf16, #tpu.memory_space<vmem>>, vector<1x8x8xbf16>
    %7 = vector.shape_cast %6 : vector<1x8x8xbf16> to vector<8x8xbf16>
    %8 = arith.extf %7 : vector<8x8xbf16> to vector<8x8xf32>
    %cst = arith.constant dense<0.000000e+00> : vector<8x8xf32>
    %9 = tpu.matmul %1, %3, %cst {dimension_numbers = #tpu.dot_dimension_numbers<[1], [1], [0], [0], [0, 0, 1, 0], [], []>} : vector<8x32xf32>, vector<8x32xf32>, vector<8x8xf32> -> vector<8x8xf32>
    %cst_11 = arith.constant 0.176776692 : f32
    %10 = vector.broadcast %cst_11 : f32 to vector<8x8xf32>
    %11 = arith.mulf %9, %10 : vector<8x8xf32>
    %12 = math.exp %11 : vector<8x8xf32>
    %13 = arith.mulf %12, %8 : vector<8x8xf32>
    %cst_12 = arith.constant dense<0.000000e+00> : vector<8xf32>
    %14 = vector.multi_reduction <add>, %13, %cst_12 [1] : vector<8x8xf32> to vector<8xf32>
    %15 = vector.shape_cast %14 : vector<8xf32> to vector<8x1xf32>
    %cst_13 = arith.constant 9.99999993E-9 : f32
    %16 = vector.broadcast %cst_13 : f32 to vector<8x1xf32>
    %17 = arith.addf %15, %16 : vector<8x1xf32>
    %cst_14 = arith.constant 1.000000e+00 : f32
    %18 = vector.broadcast %cst_14 : f32 to vector<8x1xf32>
    %19 = arith.divf %18, %17 : vector<8x1xf32>
    %20 = vector.broadcast %19 : vector<8x1xf32> to vector<8x8xf32>
    %21 = arith.mulf %13, %20 : vector<8x8xf32>
    %cst_15 = arith.constant dense<0.000000e+00> : vector<8x32xf32>
    %22 = tpu.matmul %21, %5, %cst_15 {dimension_numbers = #tpu.dot_dimension_numbers<[1], [0], [0], [1], [0, 0, 1, 1], [], []>} : vector<8x8xf32>, vector<8x32xf32>, vector<8x32xf32> -> vector<8x32xf32>
    %c0_16 = arith.constant 0 : index
    %c0_17 = arith.constant 0 : index
    %c0_18 = arith.constant 0 : index
    %23 = vector.load %arg6[%c0_16, %c0_17, %c0_18] : memref<1x8x32xf32, #tpu.memory_space<vmem>>, vector<1x8x32xf32>
    %24 = vector.shape_cast %23 : vector<1x8x32xf32> to vector<8x32xf32>
    %25 = vector.shape_cast %22 : vector<8x32xf32> to vector<1x8x32xf32>
    tpu.vector_store %arg6[%c0_16, %c0_17, %c0_18], %25 {strides = array<i32>} : memref<1x8x32xf32, #tpu.memory_space<vmem>>, vector<1x8x32xf32>,
    %c0_19 = arith.constant 0 : index
    %c0_20 = arith.constant 0 : index
    %c0_21 = arith.constant 0 : index
    %26 = vector.load %arg7[%c0_19, %c0_20, %c0_21] : memref<1x8x8xf32, #tpu.memory_space<vmem>>, vector<1x8x8xf32>
    %27 = vector.shape_cast %26 : vector<1x8x8xf32> to vector<8x8xf32>
    %28 = vector.shape_cast %21 : vector<8x8xf32> to vector<1x8x8xf32>
    tpu.vector_store %arg7[%c0_19, %c0_20, %c0_21], %28 {strides = array<i32>} : memref<1x8x8xf32, #tpu.memory_space<vmem>>, vector<1x8x8xf32>,
    return
  }
  func.func @transform_0(%arg0: i32, %arg1: i32) -> (i32, i32, i32) {
    %c0_i32 = arith.constant 0 : i32
    %c0_i32_0 = arith.constant 0 : i32
    return %arg0, %arg1, %c0_i32 : i32, i32, i32
  }
  func.func @transform_1(%arg0: i32, %arg1: i32) -> (i32, i32, i32) {
    %c0_i32 = arith.constant 0 : i32
    %c0_i32_0 = arith.constant 0 : i32
    %c0_i32_1 = arith.constant 0 : i32
    return %arg0, %c0_i32, %c0_i32_0 : i32, i32, i32
  }
  func.func @transform_2(%arg0: i32, %arg1: i32) -> (i32, i32, i32) {
    %c0_i32 = arith.constant 0 : i32
    %c0_i32_0 = arith.constant 0 : i32
    %c0_i32_1 = arith.constant 0 : i32
    return %arg0, %c0_i32, %c0_i32_0 : i32, i32, i32
  }
  func.func @transform_3(%arg0: i32, %arg1: i32) -> (i32, i32, i32) {
    %c0_i32 = arith.constant 0 : i32
    %c0_i32_0 = arith.constant 0 : i32
    return %arg0, %arg1, %c0_i32 : i32, i32, i32
  }
  func.func @transform_4(%arg0: i32, %arg1: i32) -> (i32, i32, i32) {
    %c0_i32 = arith.constant 0 : i32
    %c0_i32_0 = arith.constant 0 : i32
    return %arg0, %arg1, %c0_i32 : i32, i32, i32
  }
  func.func @transform_5(%arg0: i32, %arg1: i32) -> (i32, i32, i32) {
    %c0_i32 = arith.constant 0 : i32
    %c0_i32_0 = arith.constant 0 : i32
    return %arg0, %arg1, %c0_i32 : i32, i32, i32
  }
}

</mosaic_0001>

<bundles_post_ra>
// kernel: tpu_custom_call.1
= control target key start
LH: loop header
LB: loop body
LE: loop exit
PB: predicated region body
PF: predicated region fallthrough
CT: control target
= control target key end

     0   :  { %s1413_s0 = inlined_call_operand.hbm [shape: f32[2,8,32], index: 0, kind: input, shape index: {}]   ;;  %s1414_s1 = inlined_call_operand.hbm [shape: f32[2,8,32], index: 1, kind: input, shape index: {}]   ;;  %s1415_s2 = inlined_call_operand.hbm [shape: f32[2,8,32], index: 2, kind: input, shape index: {}]   ;;  %s1416_s3 = inlined_call_operand.vmem [shape: bf16[2,8,8], index: 3, kind: input, shape index: {}]   ;;  %s1417_s4 = inlined_call_operand.hbm [shape: f32[2,8,32], index: 4, kind: output, shape index: {0}]   ;;  %s1418_s5 = inlined_call_operand.hbm [shape: f32[2,8,8], index: 5, kind: output, shape index: {1}]  }
   0x1   :  { %1428 = sst [smem:[#allocation20_spill]] %s1414_s1 }
   0x2   :  { %11 = vsyncpa [#allocation3], 0 }
   0x3   :  { %13 = vsyncpa [#allocation3 + $0x1], 0 }
   0x4   :  { %14 = vsyncpa [#allocation6], 0 }
   0x5   :  { %16 = vsyncpa [#allocation6 + $0x1], 0 }
   0x6   :  { %17 = vsyncpa [#allocation4], 0 }
   0x7   :  { %19 = vsyncpa [#allocation4 + $0x1], 0 }
   0x8   :  { %20 = vsyncpa [#allocation10], 0 }
   0x9   :  { %22 = vsyncpa [#allocation10 + $0x1], 0  ;;  %s1113_s18 = smov 0   ;;  %s1115_s19 = smov 0  }
   0xa   :  { %s1117_s20 = smov 0   ;;  %s1119_s21 = smov 0  }
   0xb   :  { %s1121_s22 = smov 0   ;;  %s1123_s23 = smov 0  }
   0xc LB: > { %1429 = sst [smem:[#allocation15_spill]] %s1070_s22  ;;  %s1144_s24 = sadd.s32 4294967295, %s1074_s23   ;;  %s1074_s23 = sphi %s1123_s23, %s28_s23   ;;  %s1070_s22 = sphi %s1121_s22, %s1455_s22   ;;  %s1066_s21 = sphi %s1119_s21, %s1454_s21   ;;  %s1062_s20 = sphi %s1117_s20, %s1458_s20   ;;  %s1058_s19 = sphi %s1115_s19, %s1457_s19   ;;  %s1054_s18 = sphi %s1113_s18, %s1456_s18  }
   0xd   : > { %1430 = sst [smem:[#allocation16_spill]] %s1074_s23  ;;  %s744_s25 = sadd.s32 4294967294, %s1074_s23  }
   0xe   : > { %s40_s26 = sadd.s32 1, %s1070_s22  ;;  %s49_s27 = sadd.s32 1, %s1062_s20 }
   0xf   : > { %p42_p0 = scmp.ge.s32.totalorder %s40_s26, 2  ;;  %p56_p1 = scmp.ne.s32.totalorder %s1062_s20, %s1058_s19 }
  0x10   : > { %p57_p2 = scmp.eq.s32.totalorder %s1074_s23, 0  ;;  %p62_p3 = scmp.ne.s32.totalorder %s1058_s19, %s1054_s18 }
  0x11   : > { %s1460_s26 = smov (%p42_p0, %s40_s26), 0  ;;  %p63_p5 = scmp.eq.s32.totalorder %s1144_s24, 0 }
  0x12   : > { %1431 = sst [smem:[#allocation17_spill]] %s1460_s26  ;;  %p1156_p4 = por %p57_p2, %p56_p1 }
  0x13   : > { %s44_s29 = ssub.s32 %s1070_s22, %s1460_s26  ;;  %p168_p6 = scmp.eq.s32.totalorder %s1144_s24, 1 }
  0x14   : > { %p47_p7 = scmp.eq.s32.totalorder %s44_s29, 0  ;;  %p1164_p8 = por %p63_p5, %p62_p3 }
  0x15   : > { %p1168_p9 = por %p168_p6, %p56_p1  ;;  %p174_p10 = scmp.eq.s32.totalorder %s744_s25, 1 }
  0x16   : > { %s1433_s30 = scalar_select %p1164_p8, 1, 0 }
  0x17   : > { %s1434_s6 = scalar_select %p1168_p9, 1, 0 }
  0x18   : > { %s1173_s7 = scalar_select %p47_p7, %s1062_s20, %s49_s27  }
  0x19   : > { %p1175_p11 = por %p174_p10, %p62_p3  ;;  %p810_p13 = scmp.lt.s32.totalorder %s1074_s23, 2 }
  0x1a   : > { %1435 = sst [smem:[#allocation18_spill]] %s1173_s7  ;;  %s1419_s9 = sand.u32 1, %s1062_s20  }
  0x1b   : > { %s1436_s8 = scalar_select %p1175_p11, 1, 0 }
  0x1c   : > { %s1184_s10 = sshll.u32 %s1419_s9, 3  ;;  %s1187_s11 = sshll.u32 %s1070_s22, 7 }
  0x1d   : > { %1437 = sst [smem:[#allocation19_spill]] %s1436_s8  ;;  %p1191_p0 = pnand %p810_p13, %p1156_p4 }
  0x1e   : > { %s241_s13 = sand.u32 1, %s1074_s23   ;;  %s1439_s1 = sld [smem:[#allocation20_spill]] }
  0x1f   : > { %s1438_s12 = scalar_select %p1191_p0, 1, 0 }
  0x20   : > { %s245_s17 = scalar_lea.vmem [#allocation5], %s1184_s10  ;;  %s1207_s27 = scalar_lea.sflag [#allocation6], %s241_s13 }
  0x21   : > { %s252_s25 = sshll.u32 %s245_s17, 4  ;;  %p1213_p4 = pneg %p1191_p0  ;;  %s1204_s25 = int_to_ptr.vmem [resolvable:$true] %s252_s25 }
  0x24   : > { %s1200_s16 = scalar_lea.hbm %s1439_s1, %s1187_s11  ;;  %s871_s17 = scalar_lea.hbm %s1439_s1, 256 }
  0x25   : > { %s866_s28 = scalar_lea.hbm %s1200_s16, 128  ;;  %p872_p7 = scmp.lt.u32.totalorder %s1200_s16, %s1439_s1 }
  0x26   : > { %p867_p3 = scmp.ne.s32.totalorder %s1200_s16, %s866_s28  ;;  %p873_p10 = scmp.lt.u32.totalorder %s871_s17, %s866_s28 }
  0x27   : > { %p875_p12 = scmp.lt.u32.totalorder %s866_s28, %s1200_s16 }
  0x28   : > { %p869_p5 = pnand %p1213_p4, %p867_p3  ;;  %p874_p13 = por %p873_p10, %p872_p7 }
  0x2a   : > { %p870_p6 = pneg %p869_p5  ;;  %p876_p1 = por %p875_p12, %p874_p13 }
  0x2c   : > { %p877_p2 = pnand %p876_p1, %p870_p6 }
  0x2e   : > { %880 = shalt.err (!%p877_p2)
}
  0x2f   : > { %s881_s13 = scalar_lea.vmem %s1204_s25, 128  ;;  %s1076_s14 = smov [#allocation5]  }
  0x30   : > { %p882_p3 = scmp.ne.s32.totalorder %s1204_s25, %s881_s13  ;;  %s886_s15 = sshll.u32 %s1076_s14, 4  ;;  %s887_s15 = int_to_ptr.vmem [resolvable:$false] %s886_s15 }
  0x31   : > { %s888_s26 = scalar_lea.vmem %s887_s15, 256  ;;  %p889_p9 = scmp.lt.s32.totalorder %s1204_s25, %s887_s15 }
  0x32   : > { %p884_p5 = pnand %p882_p3, %p1213_p4  ;;  %p890_p8 = scmp.lt.s32.totalorder %s888_s26, %s881_s13 }
  0x34   : > { %p885_p11 = pneg %p884_p5  ;;  %p891_p7 = por %p890_p8, %p889_p9 }
  0x36   : > { %p892_p10 = pnand %p891_p7, %p885_p11 }
  0x38   : > { %895 = shalt.err (!%p892_p10)
}
  0x39   : > { %799 = dma.hbm_to_vmem [thread:$0]  (!%p1191_p0), %s1200_s16, 128, %s1204_s25, %s1207_s27  }
  0x3a   : > { %p1441_p12 = scmp.lt.s32.totalorder %s1074_s23, 3  ;;  %p1442_p1 = scmp.ge.s32.totalorder %s1074_s23, 1 }
  0x3b   : > { %s1249_s13 = scalar_lea.hbm %s1413_s0, %s1187_s11  ;;  %s226_s14 = scalar_lea.vmem [#allocation2], %s1184_s10 }
  0x3c   : > { %p1241_p2 = pnand %p1442_p1, %p1441_p12  ;;  %s234_s15 = sshll.u32 %s226_s14, 4  ;;  %s1252_s15 = int_to_ptr.vmem [resolvable:$true] %s234_s15 }
  0x3d   : > { %s1258_s26 = scalar_lea.hbm %s1415_s2, %s1187_s11  ;;  %s1444_s1 = sand.u32 1, %s1062_s20  }
  0x3e   : > { %s1443_s9 = scalar_select %p1241_p2, 1, 0 }
  0x3f   : > { %s223_s22 = scalar_lea.sflag [#allocation3], %s1444_s1  ;;  %s896_s7 = scalar_lea.hbm %s1249_s13, 128 }
  0x40   : > { %p897_p8 = scmp.ne.s32.totalorder %s1249_s13, %s896_s7  ;;  %s901_s23 = scalar_lea.hbm %s1413_s0, 256 }
  0x41   : > { %p902_p6 = scmp.lt.u32.totalorder %s1249_s13, %s1413_s0  ;;  %p903_p13 = scmp.lt.u32.totalorder %s901_s23, %s896_s7 }
  0x42   : > { %p899_p9 = pnand %p897_p8, %p1213_p4  ;;  %p905_p5 = scmp.lt.u32.totalorder %s896_s7, %s1249_s13 }
  0x43   : > { %p904_p3 = por %p903_p13, %p902_p6 }
  0x44   : > { %p900_p11 = pneg %p899_p9 }
  0x45   : > { %p906_p7 = por %p905_p5, %p904_p3 }
  0x47   : > { %p907_p10 = pnand %p906_p7, %p900_p11 }
  0x49   : > { %910 = shalt.err (!%p907_p10)
}
  0x4a   : > { %s911_s1 = scalar_lea.vmem %s1252_s15, 128  ;;  %s1077_s11 = smov [#allocation2]  }
  0x4b   : > { %p912_p12 = scmp.ne.s32.totalorder %s1252_s15, %s911_s1  ;;  %s916_s16 = sshll.u32 %s1077_s11, 4  ;;  %s917_s16 = int_to_ptr.vmem [resolvable:$false] %s916_s16 }
  0x4c   : > { %s918_s8 = scalar_lea.vmem %s917_s16, 256  ;;  %p919_p9 = scmp.lt.s32.totalorder %s1252_s15, %s917_s16 }
  0x4d   : > { %p914_p1 = pnand %p912_p12, %p1213_p4  ;;  %p920_p2 = scmp.lt.s32.totalorder %s918_s8, %s911_s1 }
  0x4f   : > { %p915_p8 = pneg %p914_p1  ;;  %p921_p6 = por %p920_p2, %p919_p9 }
  0x51   : > { %p922_p13 = pnand %p921_p6, %p915_p8 }
  0x53   : > { %925 = shalt.err (!%p922_p13)
}
  0x54   : > { %796 = dma.hbm_to_vmem [thread:$0]  (!%p1191_p0), %s1249_s13, 128, %s1252_s15, %s223_s22  }
  0x55   : > { %s263_s23 = scalar_lea.vmem [#allocation7], %s1184_s10  ;;  %s926_s25 = scalar_lea.hbm %s1258_s26, 128 }
  0x56   : > { %s270_s7 = sshll.u32 %s263_s23, 4  ;;  %p927_p11 = scmp.ne.s32.totalorder %s1258_s26, %s926_s25  ;;  %s271_s7 = int_to_ptr.vmem [resolvable:$true] %s270_s7 }
  0x57   : > { %s931_s14 = scalar_lea.hbm %s1415_s2, 256  ;;  %p932_p5 = scmp.lt.u32.totalorder %s1258_s26, %s1415_s2 }
  0x58   : > { %p929_p2 = pnand %p927_p11, %p1213_p4  ;;  %p933_p7 = scmp.lt.u32.totalorder %s931_s14, %s926_s25 }
  0x59   : > { %p935_p12 = scmp.lt.u32.totalorder %s926_s25, %s1258_s26 }
  0x5a   : > { %p930_p3 = pneg %p929_p2  ;;  %p934_p10 = por %p933_p7, %p932_p5 }
  0x5c   : > { %p936_p1 = por %p935_p12, %p934_p10 }
  0x5e   : > { %p937_p8 = pnand %p936_p1, %p930_p3 }
  0x60   : > { %940 = shalt.err (!%p937_p8)
}
  0x61   : > { %s941_s22 = scalar_lea.vmem %s271_s7, 128  ;;  %s1078_s10 = smov [#allocation7]  }
  0x62   : > { %p942_p9 = scmp.ne.s32.totalorder %s271_s7, %s941_s22  ;;  %s946_s13 = sshll.u32 %s1078_s10, 4  ;;  %s947_s13 = int_to_ptr.vmem [resolvable:$false] %s946_s13 }
  0x63   : > { %s948_s15 = scalar_lea.vmem %s947_s13, 256  ;;  %p949_p11 = scmp.lt.s32.totalorder %s271_s7, %s947_s13 }
  0x64   : > { %p944_p6 = pnand %p942_p9, %p1213_p4  ;;  %p950_p2 = scmp.lt.s32.totalorder %s948_s15, %s941_s22 }
  0x66   : > { %p945_p13 = pneg %p944_p6  ;;  %p951_p0 = por %p950_p2, %p949_p11 }
  0x68   : > { %p952_p5 = pnand %p951_p0, %p945_p13 }
  0x6a   : > { %955 = shalt.err (!%p952_p5)
}
  0x6b   : > { %p1445_p7 = scmp.ne.s32.totalorder %s1438_s12, 0  ;;  %p1446_p3 = scmp.ne.s32.totalorder %s1443_s9, 0 }
  0x6c   : > { %s1305_s29 = sand.u32 (!%p1446_p3), 1, %s1058_s19   ;;  %p1447_p0 = scmp.ne.s32.totalorder (!%p1446_p3), %s1433_s30, 0 }
  0x6d   : > { %802 = dma.hbm_to_vmem [thread:$0]  (!%p1445_p7), %s1258_s26, 128, %s271_s7, %s1207_s27  }
  0x6e   : > { %289 = sbr.rel (%p1446_p3) target bundleno = 740 (0x2e4), region = 36  ;;  %s1308_s16 = sshll.u32 (!%p1446_p3), %s1305_s29, 3 }
  0x6f   : > { %s292_s8 = scalar_lea.sflag (!%p1446_p3), [#allocation3], %s1305_s29  ;;  %s295_s23 = scalar_lea.vmem (!%p1446_p3), [#allocation2], %s1308_s16 }
  0x75   : > { %1037 = dma.done.wait (%p1447_p0), %s292_s8, 128  }
  0x76   : > { %1039 = vsyncadd (%p1447_p0), %s292_s8, 4294967168  ;;  %s300_s12 = sand.u32 1, %s1144_s24   ;;  %s304_s9 = scalar_lea.vmem [#allocation5], %s1308_s16 }
  0x77   : > { %s301_s27 = scalar_lea.sflag [#allocation6], %s300_s12 }
  0x78   : > { %1041 = dma.done.wait (%p1447_p0), %s301_s27, 256  }
  0x79   : > { %1043 = vsyncadd (%p1447_p0), %s301_s27, 4294967040  ;;  %v1079_v0 = vmov 0.0   ;;  %vm1080_vm0 = vmmov 0   ;;  %vm374_vm1 = vcmask 261120   ;;  %v370_v1 = vld [vmem:[%s304_s9] sm:$0xff]  ;;  %v369_v2 = vld [vmem:[%s295_s23] sm:$0xff] }
  0x7a   : > { %773 = vmatprep.subr.mxu0 %v1079_v0  ;;  %775 = vmatprep.mubr.msk.f32.mxu0 %vm1080_vm0, %v1079_v0  ;;  %p362_p4 = scmp.lt.s32.totalorder %s1066_s21, 1  ;;  %vm455_vm2 = vcmask 64512   ;;  %s313_s28 = scalar_lea.vmem [#allocation7], %s1308_s16 }
  0x7b   : > { %778 = vmatprep.subr.mxu1 %v1079_v0  ;;  %780 = vmatprep.mubr.msk.f32.mxu1 %vm1080_vm0, %v1079_v0  ;;  %v371_v12 = vld [vmem:[%s313_s28] sm:$0xff]  ;;  %s361_s17 = scalar_lea.vmem [#allocation9], %s1308_s16  ;;  %s765_s14 = sshll.u32 %s1066_s21, 7 }
  0x7c   : > { %774 = vmatpush3.xpose.msk.msra.mxu0 %vm374_vm1, %v370_v1  ;;  %s363_s24 = scalar_select %p362_p4, %s1066_s21, 1  ;;  %779 = vmatpush3.msra.mxu1 %v371_v12 }
  0x7d   : > { %s1337_s22 = scalar_lea.hbm %s1418_s5, %s765_s14  ;;  %s572_s10 = sshll.u32 %s361_s17, 4  ;;  %s573_s10 = int_to_ptr.vmem [resolvable:$true] %s572_s10 }
  0x7e   : > { %s759_s30 = sshll.u32 %s363_s24, 2  ;;  %s544_s13 = scalar_lea.sflag [#allocation10], %s1305_s29 }
  0x7f   : > { %776 = vmatmul.mubr.msk.f32.vlgmr.msra.gmra.mrb[0].mxu0 %vm374_vm1, %v369_v2  ;;  %s368_s25 = scalar_lea.vmem %s1416_s3, %s759_s30  ;;  %s956_s15 = scalar_lea.vmem %s573_s10, 128 }
  0x80   : > { %v372_v7 = vld [vmem:[%s368_s25] sm:$0xf]  ;;  %p957_p10 = scmp.ne.s32.totalorder %s573_s10, %s956_s15  ;;  %p1448_p12 = scmp.ne.s32.totalorder %s1434_s6, 0 }
  0x81   : > { %v373_v8 = vunpack.c.l.bf16 %v372_v7  ;;  %s1081_s8 = smov [#allocation9]  }
  0x82   : > { %p958_p1 = pnand %p957_p10, %p1448_p12  ;;  %s960_s23 = sshll.u32 %s1081_s8, 4  ;;  %s961_s23 = int_to_ptr.vmem [resolvable:$false] %s960_s23 }
  0x83   : > { %s962_s12 = scalar_lea.vmem %s961_s23, 256  ;;  %p963_p9 = scmp.lt.s32.totalorder %s573_s10, %s961_s23 }
  0x84   : > { %p959_p8 = pneg %p958_p1  ;;  %p964_p6 = scmp.lt.s32.totalorder %s962_s12, %s956_s15 }
  0x86   : > { %p965_p13 = por %p964_p6, %p963_p9 }
  0x88   : > { %p966_p11 = pnand %p965_p13, %p959_p8 }
 0x152   : > { %v447_v3 = vpop.f32.mrb[0].mxu0 }
 0x153   : > { %v451_v4 = vmul.f32 0.17677669, %v447_v3  ;;  %v777_v5 = vpop.f32.mrb[1].mxu0 }
 0x155   : > { %v452_v6 = vmul.f32 1.442695, %v451_v4 }
 0x157   : > { %862 = vpow2.f32 %v452_v6 }
 0x161   : > { %v863_v9 = vpop.eup %862 }
 0x162   : > { %v454_v10 = vmul.f32 %v863_v9, %v373_v8 }
 0x164   : > { %v456_v11 = vsel %vm455_vm2, %v454_v10, 0.0 }
 0x165   : > { %457 = vadd.xlane.f32.xlu0 %v456_v11 }
 0x1f2   : > { %v458_v13 = vpop.xlane.xlu0 %457 }
 0x1f3   : > { %v459_v14 = vadd.f32 1e-08, %v458_v13 }
 0x1f5   : > { %864 = vrcp.f32 %v459_v14 }
 0x1ff   : > { %v865_v15 = vpop.eup %864 }
 0x200   : > { %v462_v16 = vmul.f32 %v865_v15, %v454_v10 }
 0x202   : > { %781 = vmatmul.mubr.msk.f32.vlgmr.msra.gmra.mrb[0].mxu1 %vm455_vm2, %v462_v16  ;;  %537 = vst.msk [vmem:[%s361_s17] sm:$0xff] %vm455_vm2, %v462_v16 }
 0x203   : > { %969 = shalt.err (!%p966_p11)
}
 0x204   : > { %s970_s27 = scalar_lea.hbm %s1337_s22, 128  ;;  %s974_s30 = scalar_lea.hbm %s1418_s5, 256 }
 0x205   : > { %p971_p2 = scmp.ne.s32.totalorder %s1337_s22, %s970_s27  ;;  %p975_p3 = scmp.lt.u32.totalorder %s1337_s22, %s1418_s5 }
 0x206   : > { %p976_p0 = scmp.lt.u32.totalorder %s974_s30, %s970_s27  ;;  %p978_p10 = scmp.lt.u32.totalorder %s970_s27, %s1337_s22 }
 0x207   : > { %p972_p5 = pnand %p971_p2, %p1448_p12 }
 0x208   : > { %p977_p4 = por %p976_p0, %p975_p3 }
 0x209   : > { %p973_p7 = pneg %p972_p5 }
 0x20a   : > { %p979_p1 = por %p978_p10, %p977_p4 }
 0x20c   : > { %p980_p8 = pnand %p979_p1, %p973_p7 }
 0x20e   : > { %983 = shalt.err (!%p980_p8)
}
 0x20f   : > { %790 = dma.vmem_to_hbm [thread:$0]  (%p1448_p12), %s573_s10, 128, %s1337_s22, %s544_s13  }
 0x210   : > { %s354_s25 = scalar_lea.vmem [#allocation8], %s1308_s16  ;;  %s1363_s11 = scalar_lea.hbm %s1417_s4, %s765_s14 }
 0x211   : > { %s558_s28 = sshll.u32 %s354_s25, 4  ;;  %s539_s15 = scalar_lea.sflag [#allocation4], %s1305_s29  ;;  %s1365_s28 = int_to_ptr.vmem [resolvable:$true] %s558_s28 }
 0x212   : > { %s984_s8 = scalar_lea.vmem %s1365_s28, 128  ;;  %s1082_s21 = smov [#allocation8]  }
 0x213   : > { %p985_p9 = scmp.ne.s32.totalorder %s1365_s28, %s984_s8  ;;  %s988_s16 = sshll.u32 %s1082_s21, 4  ;;  %s989_s16 = int_to_ptr.vmem [resolvable:$false] %s988_s16 }
 0x214   : > { %s990_s14 = scalar_lea.vmem %s989_s16, 256  ;;  %p991_p11 = scmp.lt.s32.totalorder %s1365_s28, %s989_s16 }
 0x215   : > { %p986_p6 = pnand %p985_p9, %p1448_p12  ;;  %p992_p2 = scmp.lt.s32.totalorder %s990_s14, %s984_s8 }
 0x217   : > { %p987_p13 = pneg %p986_p6  ;;  %p993_p5 = por %p992_p2, %p991_p11 }
 0x219   : > { %p994_p7 = pnand %p993_p5, %p987_p13 }
 0x2d5   : > { %v532_v17 = vpop.f32.mrb[0].mxu1 }
 0x2d6   : > { %536 = vst.msk [vmem:[%s354_s25] sm:$0xff] %vm374_vm1, %v532_v17  ;;  %v782_v18 = vpop.f32.mrb[1].mxu1 }
 0x2d7   : > { %997 = shalt.err (!%p994_p7)
}
 0x2d8   : > { %s998_s29 = scalar_lea.hbm %s1363_s11, 128  ;;  %s1002_s13 = scalar_lea.hbm %s1417_s4, 256 }
 0x2d9   : > { %p999_p3 = scmp.ne.s32.totalorder %s1363_s11, %s998_s29  ;;  %p1003_p10 = scmp.lt.u32.totalorder %s1363_s11, %s1417_s4 }
 0x2da   : > { %p1004_p1 = scmp.lt.u32.totalorder %s1002_s13, %s998_s29  ;;  %p1006_p9 = scmp.lt.u32.totalorder %s998_s29, %s1363_s11 }
 0x2db   : > { %p1000_p0 = pnand %p999_p3, %p1448_p12 }
 0x2dc   : > { %p1005_p8 = por %p1004_p1, %p1003_p10 }
 0x2dd   : > { %p1001_p4 = pneg %p1000_p0 }
 0x2de   : > { %p1007_p6 = por %p1006_p9, %p1005_p8 }
 0x2e0   : > { %p1008_p13 = pnand %p1007_p6, %p1001_p4 }
 0x2e2   : > { %1011 = shalt.err (!%p1008_p13)
}
 0x2e3   : > { %789 = dma.vmem_to_hbm [thread:$0]  (%p1448_p12), %s1365_s28, 128, %s1363_s11, %s539_s15  }
 0x2e4 PF: > { %s1449_s27 = sld [smem:[#allocation19_spill]]  ;;  %s1450_s9 = sld [smem:[#allocation16_spill]] }
 0x2e5   : > { %s584_s24 = sand.u32 1, %s1054_s18  }
 0x2e6   : > { %s585_s30 = scalar_lea.sflag [#allocation4], %s584_s24 }
 0x2ea   : > { %p1451_p11 = scmp.ne.s32.totalorder %s1449_s27, 0  ;;  %p1452_p2 = scmp.ge.s32.totalorder %s1450_s9, 2 }
 0x2ec   : > { %p804_p5 = pnand %p1452_p2, %p1451_p11 }
 0x2ee   : > { %1045 = dma.done.wait (!%p804_p5), %s585_s30, 128  }
 0x2ef   : > { %1047 = vsyncadd (!%p804_p5), %s585_s30, 4294967168  ;;  %s594_s26 = scalar_lea.sflag [#allocation10], %s584_s24 }
 0x2f0   : > { %1049 = dma.done.wait (!%p804_p5), %s594_s26, 128  }
 0x2f1   : > { %1051 = vsyncadd (!%p804_p5), %s594_s26, 4294967168  ;;  %s28_s23 = sadd.s32 1, %s1450_s9   ;;  %s1453_s6 = sld [smem:[#allocation18_spill]] }
 0x2f2   : > { %p25_p7 = scmp.ge.s32.totalorder %s28_s23, 4   ;;  %s1454_s21 = sld [smem:[#allocation15_spill]] }
 0x2f3   : > { %s1455_s22 = sld [smem:[#allocation17_spill]]  ;;  %s1456_s18 = smov %s1058_s19 }
 0x2f4   : > { %s1457_s19 = smov %s1062_s20  ;;  %27 = sbr.rel (!%p25_p7) target bundleno = 12 (0xc), region = 125 }
 0x2f7   : > { %s1458_s20 = smov %s1453_s6 }
 0x2fb   :  { %599 = vsyncpa [#allocation3], 1 }
 0x2fc   :  { %601 = vsyncpa [#allocation3 + $0x1], 1 }
 0x2fd   :  { %602 = vsyncpa [#allocation6], 1 }
 0x2fe   :  { %604 = vsyncpa [#allocation6 + $0x1], 1 }
 0x2ff   :  { %605 = vsyncpa [#allocation4], 1 }
 0x300   :  { %607 = vsyncpa [#allocation4 + $0x1], 1 }
 0x301   :  { %608 = vsyncpa [#allocation10], 1 }
 0x302   :  { %610 = vsyncpa [#allocation10 + $0x1], 1 }

</bundles_post_ra>
